<compile_context>
chip_gen: v7x
topology: tpu7x:2x2x1
jax: 0.10.0
libtpu: 0.0.40
codegen_flags: <defaults>
</compile_context>

<pallas_src>
import jax
import jax.numpy as jnp
from jax.experimental import pallas as pl
from jax.experimental.pallas import tpu as pltpu


def _ffn_kernel_fused(x_ref, w1_ref, b1_ref, w2_ref, b2_ref, o_ref):
    # Whole pf dimension resident in VMEM (common case).
    # x_ref: [TM, hid]  w1_ref: [hid, pf]  b1_ref: [1, pf]
    # w2_ref: [pf, hid] b2_ref: [1, hid]   o_ref:  [TM, hid]
    h = jnp.dot(x_ref[...], w1_ref[...], preferred_element_type=jnp.float32)
    h = jnp.maximum(h + b1_ref[...].astype(jnp.float32), 0.0)
    # TODO(synk): training-mode dropout (pltpu.prng_random_bits + mask/scale)
    # not implemented; eval-mode dropout is the identity.
    y = jnp.dot(h.astype(w2_ref.dtype), w2_ref[...],
                preferred_element_type=jnp.float32)
    o_ref[...] = (y + b2_ref[...].astype(jnp.float32)).astype(o_ref.dtype)


def _ffn_kernel_split_pf(x_ref, w1_ref, b1_ref, w2_ref, b2_ref, o_ref, acc_ref):
    # pf-split variant: accumulate the second matmul over the pf (k) grid axis.
    # x_ref:  [TM, hid]    w1_ref: [hid, TPF]   b1_ref: [1, TPF]
    # w2_ref: [TPF, hid]   b2_ref: [1, hid]     o_ref:  [TM, hid]
    # acc_ref: VMEM f32 [TM, hid] accumulator.
    k = pl.program_id(1)

    @pl.when(k == 0)
    def _():
        acc_ref[...] = jnp.zeros_like(acc_ref)

    h = jnp.dot(x_ref[...], w1_ref[...], preferred_element_type=jnp.float32)
    h = jnp.maximum(h + b1_ref[...].astype(jnp.float32), 0.0)
    # TODO(synk): training-mode dropout not implemented (eval-mode identity).
    acc_ref[...] += jnp.dot(h.astype(w2_ref.dtype), w2_ref[...],
                            preferred_element_type=jnp.float32)

    @pl.when(k == pl.num_programs(1) - 1)
    def _():
        o_ref[...] = (acc_ref[...]
                      + b2_ref[...].astype(jnp.float32)).astype(o_ref.dtype)


def _round_up(x, n):
    return (x + n - 1) // n * n


def position_wise_ffn(x, w1, b1, w2, b2, *, tm_max=512, tpf_max=2048):
    """x: [batch, seq, hid]; w1: [hid, pf]; b1: [pf]; w2: [pf, hid]; b2: [hid]."""
    batch, seq, hid = x.shape
    pf = w1.shape[1]
    m = batch * seq

    # --- tile choices -------------------------------------------------------
    # Row tile: multiple of 8 (sublane), capped at tm_max; pad M so tiles divide.
    tm = min(_round_up(tm_max, 8), _round_up(m, 8))
    m_pad = _round_up(m, tm)
    n_m = m_pad // tm

    # pf tile: only split when pf divides cleanly into lane-aligned chunks;
    # otherwise keep the full pf as one block (always a legal block size).
    if pf > tpf_max and tpf_max % 128 == 0 and pf % tpf_max == 0:
        tpf = tpf_max
    else:
        tpf = pf
    n_k = pf // tpf

    x2d = x.reshape(m, hid)
    if m_pad != m:
        x2d = jnp.pad(x2d, ((0, m_pad - m), (0, 0)))
    b1_2d = b1.reshape(1, pf)
    b2_2d = b2.reshape(1, hid)

    isz = lambda a: jnp.dtype(a.dtype).itemsize
    # Rough VMEM budget for the chosen tiles (double-buffered DMA slabs,
    # f32 intermediate + accumulator), with headroom.
    vmem_est = int(
        2 * tm * hid * isz(x)            # x tile (double buffered)
        + 2 * tm * hid * isz(x)          # out tile (double buffered)
        + 2 * hid * tpf * isz(w1)        # w1 tile
        + 2 * tpf * hid * isz(w2)        # w2 tile
        + tm * tpf * 4                   # f32 intermediate h
        + tm * hid * 4                   # f32 accumulator scratch
        + 2 * (tpf + hid) * 4)           # biases
    vmem_limit = min(100 << 20, max(32 << 20, int(vmem_est * 1.5)))

    cost = pl.CostEstimate(
        flops=4 * m_pad * hid * pf,      # two matmuls, 2*M*hid*pf each
        transcendentals=0,
        bytes_accessed=(2 * m_pad * hid * isz(x)
                        + hid * pf * isz(w1) + pf * hid * isz(w2)
                        + (pf + hid) * isz(b1)))

    if n_k == 1:
        # Fast path: fused kernel, single "parallel" grid axis, weights resident.
        kernel = _ffn_kernel_fused
        dims = ("parallel",)
        grid_spec = pltpu.PrefetchScalarGridSpec(
            num_scalar_prefetch=0,
            grid=(n_m,),
            in_specs=[
                pl.BlockSpec((tm, hid), lambda i: (i, 0)),   # x tile
                pl.BlockSpec((hid, pf), lambda i: (0, 0)),   # w1 (resident)
                pl.BlockSpec((1, pf), lambda i: (0, 0)),     # b1 (resident)
                pl.BlockSpec((pf, hid), lambda i: (0, 0)),   # w2 (resident)
                pl.BlockSpec((1, hid), lambda i: (0, 0)),    # b2 (resident)
            ],
            out_specs=pl.BlockSpec((tm, hid), lambda i: (i, 0)),
        )
    else:
        # Large-pf path: pf reduction as the LAST grid axis + f32 accumulator.
        kernel = _ffn_kernel_split_pf
        dims = ("parallel", "arbitrary")
        grid_spec = pltpu.PrefetchScalarGridSpec(
            num_scalar_prefetch=0,
            grid=(n_m, n_k),
            in_specs=[
                pl.BlockSpec((tm, hid), lambda i, k: (i, 0)),   # x tile
                pl.BlockSpec((hid, tpf), lambda i, k: (0, k)),  # w1 slice
                pl.BlockSpec((1, tpf), lambda i, k: (0, k)),    # b1 slice
                pl.BlockSpec((tpf, hid), lambda i, k: (k, 0)),  # w2 slice
                pl.BlockSpec((1, hid), lambda i, k: (0, 0)),    # b2 (resident)
            ],
            out_specs=pl.BlockSpec((tm, hid), lambda i, k: (i, 0)),
            scratch_shapes=[pltpu.VMEM((tm, hid), jnp.float32)],
        )

    out = pl.pallas_call(
        kernel,
        out_shape=jax.ShapeDtypeStruct((m_pad, hid), x.dtype),
        grid_spec=grid_spec,
        compiler_params=pltpu.CompilerParams(
            dimension_semantics=dims,
            vmem_limit_bytes=vmem_limit),
        cost_estimate=cost,
    )(x2d, w1, b1_2d, w2, b2_2d)

    if m_pad != m:
        out = out[:m]
    return out.reshape(batch, seq, hid)


def _init_linear_params(key, in_dim, out_dim, dtype=jnp.float32):
    """Deterministic init mimicking PyTorch nn.Linear (uniform +/- 1/sqrt(in))."""
    kw, kb = jax.random.split(key)
    bound = 1.0 / (in_dim ** 0.5)
    # Stored as [in_dim, out_dim] (transposed relative to torch's [out, in]).
    w = jax.random.uniform(kw, (in_dim, out_dim), dtype, minval=-bound, maxval=bound)
    b = jax.random.uniform(kb, (out_dim,), dtype, minval=-bound, maxval=bound)
    return w, b


if __name__ == "__main__":
    key = jax.random.PRNGKey(0)

    # --- Test 1: small shapes, exercises the fused (n_k == 1) fast path. -----
    k_x, k_fc1, k_fc2 = jax.random.split(key, 3)
    batch, seq, hid_dim, pf_dim = 2, 8, 32, 64

    x = jax.random.normal(k_x, (batch, seq, hid_dim), jnp.float32)
    w1, b1 = _init_linear_params(k_fc1, hid_dim, pf_dim)
    w2, b2 = _init_linear_params(k_fc2, pf_dim, hid_dim)

    y = position_wise_ffn(x, w1, b1, w2, b2)
    jax.block_until_ready(y)

    ref = jnp.maximum(x @ w1 + b1, 0.0) @ w2 + b2   # dropout = identity (eval)
    assert y.shape == (batch, seq, hid_dim)
    assert jnp.allclose(y, ref, atol=1e-5, rtol=1e-5)

    # --- Test 2: lane-aligned pf split, exercises the accumulator path. ------
    k_x2, k_fc1b, k_fc2b = jax.random.split(jax.random.PRNGKey(1), 3)
    b2_, s2_, h2_, p2_ = 2, 8, 128, 512
    x_b = jax.random.normal(k_x2, (b2_, s2_, h2_), jnp.float32)
    w1b, b1b = _init_linear_params(k_fc1b, h2_, p2_)
    w2b, b2b = _init_linear_params(k_fc2b, p2_, h2_)

    y_b = position_wise_ffn(x_b, w1b, b1b, w2b, b2b, tpf_max=128)  # n_k = 4
    jax.block_until_ready(y_b)

    ref_b = jnp.maximum(x_b @ w1b + b1b, 0.0) @ w2b + b2b
    assert y_b.shape == (b2_, s2_, h2_)
    assert jnp.allclose(y_b, ref_b, atol=1e-4, rtol=1e-4)

    print("KERNEL_OK")
</pallas_src>

<mosaic_0001>
module attributes {stable_mosaic.version = 11 : i64} {
  func.func @_ffn_kernel_fused(%arg0: i32, %arg1: memref<16x32xf32, #tpu.memory_space<vmem>>, %arg2: memref<32x64xf32, #tpu.memory_space<vmem>>, %arg3: memref<1x64xf32, #tpu.memory_space<vmem>>, %arg4: memref<64x32xf32, #tpu.memory_space<vmem>>, %arg5: memref<1x32xf32, #tpu.memory_space<vmem>>, %arg6: memref<16x32xf32, #tpu.memory_space<vmem>>) attributes {dimension_semantics = [#tpu.dimension_semantics<parallel>], iteration_bounds = array<i64: 1>, scalar_prefetch = 0 : i64, scratch_operands = 0 : i64, tpu.core_type = #tpu.core_type<tc>, window_params = [{transform_indices = @transform_0, window_bounds = array<i64: 16, 32>}, {pipeline_mode = #tpu.pipeline_mode<synchronous>, transform_indices = @transform_1, window_bounds = array<i64: 32, 64>}, {pipeline_mode = #tpu.pipeline_mode<synchronous>, transform_indices = @transform_2, window_bounds = array<i64: 1, 64>}, {pipeline_mode = #tpu.pipeline_mode<synchronous>, transform_indices = @transform_3, window_bounds = array<i64: 64, 32>}, {pipeline_mode = #tpu.pipeline_mode<synchronous>, transform_indices = @transform_4, window_bounds = array<i64: 1, 32>}, {transform_indices = @transform_5, window_bounds = array<i64: 16, 32>}]} {
    %c0 = arith.constant 0 : index
    %c0_0 = arith.constant 0 : index
    %0 = vector.load %arg1[%c0, %c0_0] : memref<16x32xf32, #tpu.memory_space<vmem>>, vector<16x32xf32>
    %c0_1 = arith.constant 0 : index
    %c0_2 = arith.constant 0 : index
    %1 = vector.load %arg2[%c0_1, %c0_2] : memref<32x64xf32, #tpu.memory_space<vmem>>, vector<32x64xf32>
    %cst = arith.constant dense<0.000000e+00> : vector<16x64xf32>
    %2 = tpu.matmul %0, %1, %cst {dimension_numbers = #tpu.dot_dimension_numbers<[1], [0], [0], [1], [0, 0, 1, 1], [], []>} : vector<16x32xf32>, vector<32x64xf32>, vector<16x64xf32> -> vector<16x64xf32>
    %c0_3 = arith.constant 0 : index
    %c0_4 = arith.constant 0 : index
    %3 = vector.load %arg3[%c0_3, %c0_4] : memref<1x64xf32, #tpu.memory_space<vmem>>, vector<1x64xf32>
    %4 = vector.broadcast %3 : vector<1x64xf32> to vector<16x64xf32>
    %5 = arith.addf %2, %4 : vector<16x64xf32>
    %cst_5 = arith.constant 0.000000e+00 : f32
    %6 = vector.broadcast %cst_5 : f32 to vector<16x64xf32>
    %7 = arith.maximumf %5, %6 : vector<16x64xf32>
    %c0_6 = arith.constant 0 : index
    %c0_7 = arith.constant 0 : index
    %8 = vector.load %arg4[%c0_6, %c0_7] : memref<64x32xf32, #tpu.memory_space<vmem>>, vector<64x32xf32>
    %cst_8 = arith.constant dense<0.000000e+00> : vector<16x32xf32>
    %9 = tpu.matmul %7, %8, %cst_8 {dimension_numbers = #tpu.dot_dimension_numbers<[1], [0], [0], [1], [0, 0, 1, 1], [], []>} : vector<16x64xf32>, vector<64x32xf32>, vector<16x32xf32> -> vector<16x32xf32>
    %c0_9 = arith.constant 0 : index
    %c0_10 = arith.constant 0 : index
    %10 = vector.load %arg5[%c0_9, %c0_10] : memref<1x32xf32, #tpu.memory_space<vmem>>, vector<1x32xf32>
    %11 = vector.broadcast %10 : vector<1x32xf32> to vector<16x32xf32>
    %12 = arith.addf %9, %11 : vector<16x32xf32>
    %c0_11 = arith.constant 0 : index
    %c0_12 = arith.constant 0 : index
    %13 = vector.load %arg6[%c0_11, %c0_12] : memref<16x32xf32, #tpu.memory_space<vmem>>, vector<16x32xf32>
    tpu.vector_store %arg6[%c0_11, %c0_12], %12 {strides = array<i32>} : memref<16x32xf32, #tpu.memory_space<vmem>>, vector<16x32xf32>,
    return
  }
  func.func @transform_0(%arg0: i32) -> (i32, i32) {
    %c0_i32 = arith.constant 0 : i32
    %c0_i32_0 = arith.constant 0 : i32
    return %arg0, %c0_i32 : i32, i32
  }
  func.func @transform_1(%arg0: i32) -> (i32, i32) {
    %c0_i32 = arith.constant 0 : i32
    %c0_i32_0 = arith.constant 0 : i32
    %c0_i32_1 = arith.constant 0 : i32
    return %c0_i32, %c0_i32_0 : i32, i32
  }
  func.func @transform_2(%arg0: i32) -> (i32, i32) {
    %c0_i32 = arith.constant 0 : i32
    %c0_i32_0 = arith.constant 0 : i32
    %c0_i32_1 = arith.constant 0 : i32
    return %c0_i32, %c0_i32_0 : i32, i32
  }
  func.func @transform_3(%arg0: i32) -> (i32, i32) {
    %c0_i32 = arith.constant 0 : i32
    %c0_i32_0 = arith.constant 0 : i32
    %c0_i32_1 = arith.constant 0 : i32
    return %c0_i32, %c0_i32_0 : i32, i32
  }
  func.func @transform_4(%arg0: i32) -> (i32, i32) {
    %c0_i32 = arith.constant 0 : i32
    %c0_i32_0 = arith.constant 0 : i32
    %c0_i32_1 = arith.constant 0 : i32
    return %c0_i32, %c0_i32_0 : i32, i32
  }
  func.func @transform_5(%arg0: i32) -> (i32, i32) {
    %c0_i32 = arith.constant 0 : i32
    %c0_i32_0 = arith.constant 0 : i32
    return %arg0, %c0_i32 : i32, i32
  }
}

</mosaic_0001>

<bundles_post_ra>
// kernel: tpu_custom_call.1
= control target key start
LH: loop header
LB: loop body
LE: loop exit
PB: predicated region body
PF: predicated region fallthrough
CT: control target
= control target key end

     0   :  { %vm34_vm0 = vcmask 261120   ;;  %s433_s0 = inlined_call_operand.vmem [shape: f32[16,32], index: 0, kind: input, shape index: {}]   ;;  %s434_s1 = inlined_call_operand.vmem [shape: f32[32,64], index: 1, kind: input, shape index: {}]   ;;  %s435_s2 = inlined_call_operand.vmem [shape: f32[1,64], index: 2, kind: input, shape index: {}]   ;;  %s436_s3 = inlined_call_operand.vmem [shape: f32[64,32], index: 3, kind: input, shape index: {}]   ;;  %s437_s4 = inlined_call_operand.vmem [shape: f32[1,32], index: 4, kind: input, shape index: {}]   ;;  %s438_s5 = inlined_call_operand.hbm [shape: f32[16,32], index: 5, kind: output, shape index: {}]  }
   0x1   :  { %v23_v0 = vld [vmem:[%s434_s1] sm:$0xff]  ;;  %v24_v1 = vld [vmem:[%s434_s1 + $0x8] sm:$0xff]  ;;  %v25_v2 = vld [vmem:[%s434_s1 + $0x10] sm:$0xff] }
   0x2   :  { %v285_v3 = vpack.c.bf16 %v24_v1, %v23_v0  ;;  %v26_v4 = vld [vmem:[%s434_s1 + $0x18] sm:$0xff]  ;;  %v21_v5 = vld [vmem:[%s433_s0] sm:$0xff]  ;;  %v119_v8 = vld [vmem:[%s436_s3 + $0x8] sm:$0xff] }
   0x3   :  { %v289_v6 = vpack.c.bf16 %v26_v4, %v25_v2  ;;  %263 = vmatprep.mubr.msk.f32.mxu0 %vm34_vm0, %v21_v5  ;;  %v118_v7 = vld [vmem:[%s436_s3] sm:$0xff]  ;;  %v120_v9 = vld [vmem:[%s436_s3 + $0x10] sm:$0xff]  ;;  %v121_v11 = vld [vmem:[%s436_s3 + $0x18] sm:$0xff] }
   0x4   :  { %286 = vmatprep.subr.bf16.mxu0 %v285_v3  ;;  %v293_v10 = vpack.c.bf16 %v119_v8, %v118_v7  ;;  %v297_v12 = vpack.c.bf16 %v121_v11, %v120_v9  ;;  %v122_v13 = vld [vmem:[%s436_s3 + $0x20] sm:$0xff]  ;;  %v123_v14 = vld [vmem:[%s436_s3 + $0x28] sm:$0xff] }
   0x5   :  { %288 = vmatpush3.bf16.msra.mxu0 %v285_v3 }
   0x6   :  { %10 = vsyncpa [#allocation3], 0  ;;  %290 = vmatprep.subr.bf16.mxu0 %v289_v6  ;;  %294 = vmatprep.subr.bf16.mxu1 %v293_v10  ;;  %v301_v15 = vpack.c.bf16 %v123_v14, %v122_v13  ;;  %v22_v16 = vld [vmem:[%s433_s0 + $0x8] sm:$0xff]  ;;  %v124_v17 = vld [vmem:[%s436_s3 + $0x30] sm:$0xff]  ;;  %vm133_vm1 = vcmask 523264  }
   0x7   :  { %296 = vmatpush3.bf16.msra.mxu1 %v293_v10  ;;  %v125_v18 = vld [vmem:[%s436_s3 + $0x38] sm:$0xff]  ;;  %v233_v20 = vld [vmem:[%s435_s2] ss:$0 sm:$0xff]  ;;  %s336_s3 = smov [#allocation2]  }
   0x8   :  { %298 = vmatprep.subr.bf16.mxu1 %v297_v12  ;;  %v305_v19 = vpack.c.bf16 %v125_v18, %v124_v17  ;;  %v236_v27 = vld [vmem:[%s437_s4] ss:$0 sm:$0xff]  ;;  %s222_s23 = sshll.u32 %s336_s3, 4  ;;  %s223_s23 = int_to_ptr.vmem [resolvable:$true] %s222_s23 }
   0x9   :  { %292 = vmatpush3.bf16.msra.mxu0 %v289_v6  ;;  %s312_s2 = scalar_lea.vmem %s223_s23, 256  ;;  %p317_p1 = scmp.lt.s32.totalorder %s223_s23, %s223_s23 }
   0xa   :  { %p313_p0 = scmp.ne.s32.totalorder %s223_s23, %s312_s2  ;;  %p318_p2 = scmp.lt.s32.totalorder %s312_s2, %s312_s2 }
   0xb   :  { %300 = vmatpush3.bf16.msra.mxu1 %v297_v12 }
   0xc   :  { %264 = vmatmul.mubr.msk.f32.vlgmr.msra.gmra.mrb[0].mxu0 %vm34_vm0, %v22_v16  ;;  %302 = vmatprep.subr.bf16.mxu1 %v301_v15  ;;  %p319_p3 = por %p318_p2, %p317_p1 }
   0xe   :  { %p320_p4 = pnand %p319_p3, %p313_p0 }
   0xf   :  { %304 = vmatpush3.bf16.msra.mxu1 %v301_v15 }
  0x10   :  { %306 = vmatprep.subr.bf16.mxu1 %v305_v19 }
  0x13   :  { %308 = vmatpush3.bf16.msra.mxu1 %v305_v19 }
  0xdf   :  { %v265_v21 = vpop.f32.mrb[0].mxu0 }
  0xe0   :  { %v113_v22 = vadd.f32 %v265_v21, %v233_v20  ;;  %v107_v23 = vpop.f32.mrb[1].mxu0 }
  0xe1   :  { %v108_v24 = vadd.f32 %v233_v20, %v107_v23 }
  0xe2   :  { %v117_v26 = vmax.f32 %v113_v22, 0.0 }
  0xe3   :  { %v116_v25 = vmax.f32 %v108_v24, 0.0 }
  0xe5   :  { %282 = vmatprep.mubr.msk.f32.mxu1 %vm133_vm1, %v116_v25 }
  0xe6   :  { %283 = vmatmul.mubr.msk.f32.vlgmr.msra.gmra.mrb[0].mxu1 %vm133_vm1, %v117_v26 }
 0x1b9   :  { %v284_v28 = vpop.f32.mrb[0].mxu1 }
 0x1ba   :  { %v212_v29 = vadd.f32 %v284_v28, %v236_v27  ;;  %v206_v30 = vpop.f32.mrb[1].mxu1 }
 0x1bb   :  { %v207_v31 = vadd.f32 %v236_v27, %v206_v30 }
 0x1bc   :  { %216 = vst.msk [vmem:[#allocation2 + $0x8] sm:$0xff] %vm34_vm0, %v212_v29 }
 0x1bd   :  { %215 = vst.msk [vmem:[#allocation2] sm:$0xff] %vm34_vm0, %v207_v31 }
 0x1be   :  { %323 = shalt.err (!%p320_p4)
}
 0x1bf   :  { %s324_s25 = scalar_lea.hbm %s438_s5, 256 }
 0x1c0   :  { %p325_p5 = scmp.ne.s32.totalorder %s438_s5, %s324_s25  ;;  %p328_p6 = scmp.lt.u32.totalorder %s324_s25, %s438_s5 }
 0x1c2   :  { %p330_p7 = pnand %p328_p6, %p325_p5 }
 0x1c4   :  { %333 = shalt.err (!%p330_p7)
}
 0x1c5   :  { %s337_s30 = smov 128   ;;  %s338_s6 = smov 8  }
 0x1c6   :  { %228 = dma.vmem_to_hbm [thread:$0]  %s223_s23, 256, %s438_s5, [#allocation3], %s337_s30, %s337_s30, %s338_s6  }
 0x1c7   :  { %334 = dma.done.wait [#allocation3], 256  }
 0x1c8   :  { %335 = vsyncadd [#allocation3], 4294967040 }
 0x1c9   :  { %232 = vsyncpa [#allocation3], 1 }

</bundles_post_ra>
